<compile_context>
chip_gen: v7x
topology: tpu7x:2x2x1
jax: 0.10.0
libtpu: 0.0.40
codegen_flags: <defaults>
</compile_context>

<pallas_src>
import functools
import math

import jax
import jax.numpy as jnp
from jax.experimental import pallas as pl
from jax.experimental.pallas import tpu as pltpu

EPS = 1e-5  # BatchNorm1d default


def gbn_kernel(inv_count, eps, x_ref, wb_ref, o_ref):
    # x_ref: (chunk, L, C) -- one ghost batch, channels on lanes.
    # wb_ref: (2, C) -- row 0 = gamma, row 1 = beta.
    x = x_ref[...]
    gamma = wb_ref[0:1, :]                                  # (1, C)
    beta = wb_ref[1:2, :]                                   # (1, C)

    # Per-channel mean over (chunk, L); two single-axis reductions (no reshape).
    s = jnp.sum(x, axis=0, keepdims=True)                   # (1, L, C)
    mean = jnp.sum(s, axis=1, keepdims=True) * inv_count    # (1, 1, C)

    d = x - mean
    sq = jnp.sum(d * d, axis=0, keepdims=True)              # (1, L, C)
    var = jnp.sum(sq, axis=1, keepdims=True) * inv_count    # (1, 1, C) biased var

    inv = jax.lax.rsqrt(var + eps)                          # EUP, no divide
    o_ref[...] = d * (inv * gamma) + beta


def gbn(x, gamma, beta, *, virtual_batch_size=128, eps=EPS):
    """Ghost Batch Norm forward. x: (N, C) or (N, C, L) like torch BatchNorm1d."""
    x = x.astype(jnp.float32)
    if x.ndim == 2:
        x3 = x[:, None, :]                                  # (N, 1, C)
    elif x.ndim == 3:
        x3 = jnp.transpose(x, (0, 2, 1))                    # (N, L, C) channels->lanes
    else:
        raise ValueError("BatchNorm1d expects (N, C) or (N, C, L)")

    N, L, C = x3.shape
    num_chunks = math.ceil(N / virtual_batch_size)
    assert N % num_chunks == 0, (
        "TODO(synk): ragged last ghost batch not supported")
    chunk = N // num_chunks

    wb = jnp.stack([gamma.astype(jnp.float32),
                    beta.astype(jnp.float32)], axis=0)      # (2, C) single DMA

    kernel = functools.partial(gbn_kernel, 1.0 / float(chunk * L), eps)
    out = pl.pallas_call(
        kernel,
        grid=(num_chunks,),
        in_specs=[pl.BlockSpec((chunk, L, C), lambda i: (i, 0, 0)),
                  pl.BlockSpec((2, C), lambda i: (0, 0))],
        out_specs=pl.BlockSpec((chunk, L, C), lambda i: (i, 0, 0)),
        out_shape=jax.ShapeDtypeStruct((N, L, C), jnp.float32),
        compiler_params=pltpu.CompilerParams(
            dimension_semantics=("parallel",)),
    )(x3, wb)

    if x.ndim == 2:
        return out[:, 0, :]
    return jnp.transpose(out, (0, 2, 1))                    # back to (N, C, L)


# ---------------- pure-JAX reference (mirrors the PyTorch module) -------------

def _bn_ref(xc, gamma, beta, eps):
    axes = (0,) if xc.ndim == 2 else (0, 2)
    mean = jnp.mean(xc, axis=axes, keepdims=True)
    var = jnp.mean((xc - mean) ** 2, axis=axes, keepdims=True)
    g = gamma.reshape((1, -1) + (1,) * (xc.ndim - 2))
    b = beta.reshape((1, -1) + (1,) * (xc.ndim - 2))
    return (xc - mean) / jnp.sqrt(var + eps) * g + b


def gbn_ref(x, gamma, beta, vbs, eps=EPS):
    N = x.shape[0]
    n_chunks = math.ceil(N / vbs)
    csize = math.ceil(N / n_chunks)
    outs = [_bn_ref(x[i * csize:(i + 1) * csize], gamma, beta, eps)
            for i in range(n_chunks)]
    return jnp.concatenate(outs, axis=0)


if __name__ == "__main__":
    key = jax.random.PRNGKey(0)
    k1, k2, k3, k4 = jax.random.split(key, 4)

    # Case 1: 2D input (N, C) with 4 ghost batches.
    N, C, vbs = 32, 64, 8
    x2 = jax.random.normal(k1, (N, C), jnp.float32)
    g2 = 1.0 + 0.1 * jax.random.normal(k2, (C,), jnp.float32)
    b2 = 0.1 * jax.random.normal(k3, (C,), jnp.float32)
    y2 = gbn(x2, g2, b2, virtual_batch_size=vbs)
    jax.block_until_ready(y2)
    r2 = gbn_ref(x2, g2, b2, vbs)
    assert y2.shape == x2.shape
    assert float(jnp.max(jnp.abs(y2 - r2))) < 1e-4

    # Case 2: 3D input (N, C, L) -- BatchNorm1d with a length dim, 2 ghost batches.
    N, C, L, vbs = 16, 32, 8, 8
    x3 = jax.random.normal(k4, (N, C, L), jnp.float32)
    g3 = jnp.ones((C,), jnp.float32)
    b3 = jnp.zeros((C,), jnp.float32)
    y3 = gbn(x3, g3, b3, virtual_batch_size=vbs)
    jax.block_until_ready(y3)
    r3 = gbn_ref(x3, g3, b3, vbs)
    assert y3.shape == x3.shape
    assert float(jnp.max(jnp.abs(y3 - r3))) < 1e-4

    print("KERNEL_OK")
</pallas_src>

<mosaic_0001>
module attributes {stable_mosaic.version = 11 : i64} {
  func.func @gbn_kernel(%arg0: i32, %arg1: memref<8x1x64xf32, #tpu.memory_space<vmem>>, %arg2: memref<2x64xf32, #tpu.memory_space<vmem>>, %arg3: memref<8x1x64xf32, #tpu.memory_space<vmem>>) attributes {dimension_semantics = [#tpu.dimension_semantics<parallel>], iteration_bounds = array<i64: 4>, scalar_prefetch = 0 : i64, scratch_operands = 0 : i64, tpu.core_type = #tpu.core_type<tc>, window_params = [{transform_indices = @transform_0, window_bounds = array<i64: 8, 1, 64>}, {pipeline_mode = #tpu.pipeline_mode<synchronous>, transform_indices = @transform_1, window_bounds = array<i64: 2, 64>}, {transform_indices = @transform_2, window_bounds = array<i64: 8, 1, 64>}]} {
    %c0 = arith.constant 0 : index
    %c0_0 = arith.constant 0 : index
    %c0_1 = arith.constant 0 : index
    %0 = vector.load %arg1[%c0, %c0_0, %c0_1] : memref<8x1x64xf32, #tpu.memory_space<vmem>>, vector<8x1x64xf32>
    %c0_2 = arith.constant 0 : index
    %c0_3 = arith.constant 0 : index
    %1 = vector.load %arg2[%c0_2, %c0_3] : memref<2x64xf32, #tpu.memory_space<vmem>>, vector<1x64xf32>
    %c1 = arith.constant 1 : index
    %c0_4 = arith.constant 0 : index
    %2 = vector.load %arg2[%c1, %c0_4] : memref<2x64xf32, #tpu.memory_space<vmem>>, vector<1x64xf32>
    %cst = arith.constant dense<0.000000e+00> : vector<1x64xf32>
    %3 = vector.multi_reduction <add>, %0, %cst [0] : vector<8x1x64xf32> to vector<1x64xf32>
    %4 = vector.shape_cast %3 : vector<1x64xf32> to vector<1x1x64xf32>
    %cst_5 = arith.constant dense<0.000000e+00> : vector<1x64xf32>
    %5 = vector.multi_reduction <add>, %4, %cst_5 [1] : vector<1x1x64xf32> to vector<1x64xf32>
    %6 = vector.shape_cast %5 : vector<1x64xf32> to vector<1x1x64xf32>
    %cst_6 = arith.constant 1.250000e-01 : f32
    %7 = vector.broadcast %cst_6 : f32 to vector<1x1x64xf32>
    %8 = arith.mulf %6, %7 : vector<1x1x64xf32>
    %9 = vector.broadcast %8 : vector<1x1x64xf32> to vector<8x1x64xf32>
    %10 = arith.subf %0, %9 : vector<8x1x64xf32>
    %11 = arith.mulf %10, %10 : vector<8x1x64xf32>
    %cst_7 = arith.constant dense<0.000000e+00> : vector<1x64xf32>
    %12 = vector.multi_reduction <add>, %11, %cst_7 [0] : vector<8x1x64xf32> to vector<1x64xf32>
    %13 = vector.shape_cast %12 : vector<1x64xf32> to vector<1x1x64xf32>
    %cst_8 = arith.constant dense<0.000000e+00> : vector<1x64xf32>
    %14 = vector.multi_reduction <add>, %13, %cst_8 [1] : vector<1x1x64xf32> to vector<1x64xf32>
    %15 = vector.shape_cast %14 : vector<1x64xf32> to vector<1x1x64xf32>
    %cst_9 = arith.constant 1.250000e-01 : f32
    %16 = vector.broadcast %cst_9 : f32 to vector<1x1x64xf32>
    %17 = arith.mulf %15, %16 : vector<1x1x64xf32>
    %cst_10 = arith.constant 9.99999974E-6 : f32
    %18 = vector.broadcast %cst_10 : f32 to vector<1x1x64xf32>
    %19 = arith.addf %17, %18 : vector<1x1x64xf32>
    %20 = math.rsqrt %19 : vector<1x1x64xf32>
    %21 = vector.shape_cast %1 : vector<1x64xf32> to vector<1x1x64xf32>
    %22 = arith.mulf %20, %21 : vector<1x1x64xf32>
    %23 = vector.broadcast %22 : vector<1x1x64xf32> to vector<8x1x64xf32>
    %24 = arith.mulf %10, %23 : vector<8x1x64xf32>
    %25 = vector.shape_cast %2 : vector<1x64xf32> to vector<1x1x64xf32>
    %26 = vector.broadcast %25 : vector<1x1x64xf32> to vector<8x1x64xf32>
    %27 = arith.addf %24, %26 : vector<8x1x64xf32>
    %c0_11 = arith.constant 0 : index
    %c0_12 = arith.constant 0 : index
    %c0_13 = arith.constant 0 : index
    %28 = vector.load %arg3[%c0_11, %c0_12, %c0_13] : memref<8x1x64xf32, #tpu.memory_space<vmem>>, vector<8x1x64xf32>
    tpu.vector_store %arg3[%c0_11, %c0_12, %c0_13], %27 {strides = array<i32>} : memref<8x1x64xf32, #tpu.memory_space<vmem>>, vector<8x1x64xf32>,
    return
  }
  func.func @transform_0(%arg0: i32) -> (i32, i32, i32) {
    %c0_i32 = arith.constant 0 : i32
    %c0_i32_0 = arith.constant 0 : i32
    %c0_i32_1 = arith.constant 0 : i32
    return %arg0, %c0_i32, %c0_i32_0 : i32, i32, i32
  }
  func.func @transform_1(%arg0: i32) -> (i32, i32) {
    %c0_i32 = arith.constant 0 : i32
    %c0_i32_0 = arith.constant 0 : i32
    %c0_i32_1 = arith.constant 0 : i32
    return %c0_i32, %c0_i32_0 : i32, i32
  }
  func.func @transform_2(%arg0: i32) -> (i32, i32, i32) {
    %c0_i32 = arith.constant 0 : i32
    %c0_i32_0 = arith.constant 0 : i32
    %c0_i32_1 = arith.constant 0 : i32
    return %arg0, %c0_i32, %c0_i32_0 : i32, i32, i32
  }
}

</mosaic_0001>

<bundles_post_ra>
// kernel: tpu_custom_call.1
= control target key start
LH: loop header
LB: loop body
LE: loop exit
PB: predicated region body
PF: predicated region fallthrough
CT: control target
= control target key end

     0   :  { %7 = vsyncpa [#allocation3], 0  ;;  %s720_s0 = inlined_call_operand.hbm [shape: f32[32,1,64], index: 0, kind: input, shape index: {}]   ;;  %s721_s1 = inlined_call_operand.vmem [shape: f32[2,64], index: 1, kind: input, shape index: {}]   ;;  %s722_s2 = inlined_call_operand.hbm [shape: f32[32,1,64], index: 2, kind: output, shape index: {}]  }
   0x1   :  { %9 = vsyncpa [#allocation3 + $0x1], 0 }
   0x2   :  { %10 = vsyncpa [#allocation4], 0 }
   0x3   :  { %12 = vsyncpa [#allocation4 + $0x1], 0  ;;  %s526_s9 = smov 0   ;;  %s528_s10 = smov 0  }
   0x4   :  { %s530_s11 = smov 0   ;;  %s532_s12 = smov 0  }
   0x5 LB: > { %s547_s13 = sadd.s32 4294967295, %s503_s12   ;;  %s339_s14 = sadd.s32 4294967294, %s503_s12   ;;  %s503_s12 = sphi %s532_s12, %s734_s12   ;;  %s499_s11 = sphi %s530_s11, %s733_s11   ;;  %s495_s10 = sphi %s528_s10, %s732_s10   ;;  %s491_s9 = sphi %s526_s9, %s731_s9  }
   0x6   : > { %s551_s15 = sadd.s32 1, %s503_s12   ;;  %s25_s16 = sadd.s32 1, %s499_s11 }
   0x7   : > { %s22_s17 = ssub.s32 %s503_s12, %s551_s15  ;;  %p32_p0 = scmp.ne.s32.totalorder %s499_s11, %s495_s10 }
   0x8   : > { %p23_p1 = scmp.eq.s32.totalorder %s22_s17, 0  ;;  %p33_p2 = scmp.eq.s32.totalorder %s503_s12, 0 }
   0x9   : > { %p38_p3 = scmp.ne.s32.totalorder %s495_s10, %s491_s9  ;;  %p39_p4 = scmp.eq.s32.totalorder %s547_s13, 0 }
   0xa   : > { %s563_s18 = scalar_select %p23_p1, %s499_s11, %s25_s16  }
   0xb   : > { %p565_p5 = por %p33_p2, %p32_p0  ;;  %p569_p6 = por %p39_p4, %p38_p3 }
   0xc   : > { %p83_p7 = scmp.eq.s32.totalorder %s547_s13, 3  ;;  %p89_p8 = scmp.eq.s32.totalorder %s339_s14, 3 }
   0xd   : > { %p367_p9 = scmp.lt.s32.totalorder %s503_s12, 4  ;;  %s112_s23 = sand.u32 1, %s499_s11  }
   0xe   : > { %p575_p10 = por %p83_p7, %p32_p0  ;;  %p579_p11 = por %p89_p8, %p38_p3 }
   0xf   : > { %s353_s24 = sshll.u32 %s503_s12, 7  ;;  %s342_s25 = sshll.u32 %s112_s23, 3 }
  0x10   : > { %s726_s21 = scalar_select %p575_p10, 1, 0 }
  0x11   : > { %s727_s22 = scalar_select %p579_p11, 1, 0 }
  0x12   : > { %s588_s28 = scalar_lea.hbm %s720_s0, %s353_s24  ;;  %s116_s29 = scalar_lea.vmem [#allocation2], %s342_s25 }
  0x13   : > { %s123_s30 = sshll.u32 %s116_s29, 4  ;;  %p592_p12 = pnand %p367_p9, %p565_p5  ;;  %s596_s30 = int_to_ptr.vmem [resolvable:$true] %s123_s30 }
  0x14   : > { %s598_s4 = scalar_lea.sflag [#allocation3], %s112_s23  ;;  %s407_s5 = scalar_lea.hbm %s588_s28, 128 }
  0x15   : > { %p408_p13 = scmp.ne.s32.totalorder %s588_s28, %s407_s5  ;;  %p409_p0 = pneg %p592_p12 }
  0x16   : > { %s412_s8 = scalar_lea.hbm %s720_s0, 512  ;;  %p413_p3 = scmp.lt.u32.totalorder %s588_s28, %s720_s0 }
  0x17   : > { %p410_p1 = pnand %p409_p0, %p408_p13  ;;  %p414_p4 = scmp.lt.u32.totalorder %s412_s8, %s407_s5 }
  0x18   : > { %p416_p7 = scmp.lt.u32.totalorder %s407_s5, %s588_s28 }
  0x19   : > { %p411_p2 = pneg %p410_p1  ;;  %p415_p5 = por %p414_p4, %p413_p3 }
  0x1b   : > { %p417_p8 = por %p416_p7, %p415_p5 }
  0x1d   : > { %p418_p9 = pnand %p417_p8, %p411_p2 }
  0x1f   : > { %421 = shalt.err (!%p418_p9)
}
  0x20   : > { %s422_s17 = scalar_lea.vmem %s596_s30, 128  ;;  %s505_s19 = smov [#allocation2]  }
  0x21   : > { %p423_p13 = scmp.ne.s32.totalorder %s596_s30, %s422_s17  ;;  %s427_s23 = sshll.u32 %s505_s19, 4  ;;  %s428_s23 = int_to_ptr.vmem [resolvable:$false] %s427_s23 }
  0x22   : > { %s429_s24 = scalar_lea.vmem %s428_s23, 256  ;;  %p430_p10 = scmp.lt.s32.totalorder %s596_s30, %s428_s23 }
  0x23   : > { %p425_p1 = pnand %p423_p13, %p409_p0  ;;  %p431_p3 = scmp.lt.s32.totalorder %s429_s24, %s422_s17 }
  0x25   : > { %p426_p11 = pneg %p425_p1  ;;  %p432_p4 = por %p431_p3, %p430_p10 }
  0x27   : > { %p433_p5 = pnand %p432_p4, %p426_p11 }
  0x29   : > { %436 = shalt.err (!%p433_p5)
}
  0x2a   : > { %s506_s25 = smov 16   ;;  %s507_s26 = smov 1  }
  0x2b   : > { %362 = dma.hbm_to_vmem [thread:$0]  (!%p592_p12), %s588_s28, 128, %s596_s30, %s598_s4, %s506_s25, %s506_s25, %s507_s26  }
  0x2c   : > { %p345_p0 = scmp.ge.s32.totalorder %s503_s12, 1  ;;  %p131_p2 = scmp.lt.s32.totalorder %s503_s12, 5 }
  0x2e   : > { %p132_p7 = pnand %p345_p0, %p131_p2 }
  0x2f   : > { %s629_s27 = sand.u32 (!%p132_p7), 1, %s495_s10  }
  0x30   : > { %135 = sbr.rel (%p132_p7) target bundleno = 132 (0x84), region = 28  ;;  %s346_s29 = sshll.u32 (!%p132_p7), %s629_s27, 3 }
  0x31   : > { %s138_s5 = scalar_lea.sflag (!%p132_p7), [#allocation3], %s629_s27  ;;  %s141_s6 = scalar_lea.vmem (!%p132_p7), [#allocation2], %s346_s29 }
  0x37   : > { %482 = dma.done.wait (%p569_p6), %s138_s5, 128  }
  0x38   : > { %484 = vsyncadd (%p569_p6), %s138_s5, 4294967168  ;;  %vm174_vm0 = vcmask 516096   ;;  %v164_v0 = vld [vmem:[%s141_s6] sm:$0x1]  ;;  %v165_v1 = vld [vmem:[%s141_s6 + $0x1] sm:$0x1] }
  0x39   : > { %v166_v2 = vld [vmem:[%s141_s6 + $0x2] sm:$0x1]  ;;  %v167_v3 = vld [vmem:[%s141_s6 + $0x3] sm:$0x1]  ;;  %v175_v4 = vsel %vm174_vm0, %v164_v0, 0.0  ;;  %v176_v5 = vsel %vm174_vm0, %v165_v1, 0.0 }
  0x3a   : > { %v178_v6 = vsel %vm174_vm0, %v166_v2, 0.0  ;;  %v168_v7 = vld [vmem:[%s141_s6 + $0x4] sm:$0x1]  ;;  %v177_v8 = vadd.f32 %v176_v5, %v175_v4  ;;  %v180_v9 = vsel %vm174_vm0, %v167_v3, 0.0  ;;  %v169_v10 = vld [vmem:[%s141_s6 + $0x5] sm:$0x1] }
  0x3b   : > { %v182_v12 = vsel %vm174_vm0, %v168_v7, 0.0  ;;  %v170_v13 = vld [vmem:[%s141_s6 + $0x6] sm:$0x1]  ;;  %v184_v15 = vsel %vm174_vm0, %v169_v10, 0.0  ;;  %v171_v16 = vld [vmem:[%s141_s6 + $0x7] sm:$0x1] }
  0x3c   : > { %v179_v11 = vadd.f32 %v178_v6, %v177_v8  ;;  %v186_v18 = vsel %vm174_vm0, %v170_v13, 0.0  ;;  %v188_v20 = vsel %vm174_vm0, %v171_v16, 0.0  ;;  %v172_v57 = vld [vmem:[%s721_s1] sm:$0x1]  ;;  %v173_v60 = vld [vmem:[%s721_s1 + $0x1] sm:$0x1] }
  0x3d   : > { %s161_s4 = scalar_lea.vmem [#allocation5], %s346_s29  ;;  %s354_s8 = sshll.u32 %s547_s13, 7 }
  0x3e   : > { %v181_v14 = vadd.f32 %v180_v9, %v179_v11  ;;  %s266_s7 = sshll.u32 %s161_s4, 4  ;;  %s669_s13 = scalar_lea.hbm %s722_s2, %s354_s8  ;;  %s664_s7 = int_to_ptr.vmem [resolvable:$true] %s266_s7 }
  0x3f   : > { %s253_s17 = scalar_lea.sflag [#allocation4], %s629_s27  ;;  %s437_s19 = scalar_lea.vmem %s664_s7, 128 }
  0x40   : > { %v183_v17 = vadd.f32 %v182_v12, %v181_v14  ;;  %p438_p6 = scmp.ne.s32.totalorder %s664_s7, %s437_s19  ;;  %p729_p10 = scmp.ne.s32.totalorder %s726_s21, 0 }
  0x41   : > { %s508_s23 = smov [#allocation5]  }
  0x42   : > { %v185_v19 = vadd.f32 %v184_v15, %v183_v17  ;;  %p439_p11 = pnand %p438_p6, %p729_p10  ;;  %s441_s24 = sshll.u32 %s508_s23, 4  ;;  %s442_s24 = int_to_ptr.vmem [resolvable:$false] %s441_s24 }
  0x43   : > { %s443_s25 = scalar_lea.vmem %s442_s24, 256  ;;  %p444_p8 = scmp.lt.s32.totalorder %s664_s7, %s442_s24 }
  0x44   : > { %v187_v21 = vadd.f32 %v186_v18, %v185_v19  ;;  %p440_p12 = pneg %p439_p11  ;;  %p445_p9 = scmp.lt.s32.totalorder %s443_s25, %s437_s19 }
  0x46   : > { %v189_v22 = vadd.f32 %v188_v20, %v187_v21  ;;  %p446_p13 = por %p445_p9, %p444_p8 }
  0x48   : > { %v191_v23 = vmul.f32 0.125, %v189_v22  ;;  %p447_p1 = pnand %p446_p13, %p440_p12 }
  0x4a   : > { %v192_v24 = vsub.f32 %v164_v0, %v191_v23  ;;  %v193_v25 = vsub.f32 %v165_v1, %v191_v23  ;;  %v194_v26 = vsub.f32 %v166_v2, %v191_v23  ;;  %v195_v27 = vsub.f32 %v167_v3, %v191_v23 }
  0x4b   : > { %v196_v28 = vsub.f32 %v168_v7, %v191_v23  ;;  %v197_v29 = vsub.f32 %v169_v10, %v191_v23  ;;  %v198_v34 = vsub.f32 %v170_v13, %v191_v23  ;;  %v199_v40 = vsub.f32 %v171_v16, %v191_v23 }
  0x4c   : > { %v200_v30 = vmul.f32 %v192_v24, %v192_v24  ;;  %v201_v31 = vmul.f32 %v193_v25, %v193_v25  ;;  %v202_v32 = vmul.f32 %v194_v26, %v194_v26  ;;  %v203_v33 = vmul.f32 %v195_v27, %v195_v27 }
  0x4d   : > { %v204_v35 = vmul.f32 %v196_v28, %v196_v28  ;;  %v205_v41 = vmul.f32 %v197_v29, %v197_v29  ;;  %v206_v44 = vmul.f32 %v198_v34, %v198_v34  ;;  %v207_v47 = vmul.f32 %v199_v40, %v199_v40 }
  0x4e   : > { %v208_v36 = vsel %vm174_vm0, %v200_v30, 0.0  ;;  %v209_v37 = vsel %vm174_vm0, %v201_v31, 0.0  ;;  %v211_v38 = vsel %vm174_vm0, %v202_v32, 0.0  ;;  %v213_v42 = vsel %vm174_vm0, %v203_v33, 0.0 }
  0x4f   : > { %v210_v39 = vadd.f32 %v209_v37, %v208_v36  ;;  %v215_v45 = vsel %vm174_vm0, %v204_v35, 0.0  ;;  %v217_v48 = vsel %vm174_vm0, %v205_v41, 0.0  ;;  %v219_v50 = vsel %vm174_vm0, %v206_v44, 0.0 }
  0x50   : > { %v221_v52 = vsel %vm174_vm0, %v207_v47, 0.0 }
  0x51   : > { %v212_v43 = vadd.f32 %v211_v38, %v210_v39 }
  0x53   : > { %v214_v46 = vadd.f32 %v213_v42, %v212_v43 }
  0x55   : > { %v216_v49 = vadd.f32 %v215_v45, %v214_v46 }
  0x57   : > { %v218_v51 = vadd.f32 %v217_v48, %v216_v49 }
  0x59   : > { %v220_v53 = vadd.f32 %v219_v50, %v218_v51 }
  0x5b   : > { %v222_v54 = vadd.f32 %v221_v52, %v220_v53 }
  0x5d   : > { %v224_v55 = vmul.f32 0.125, %v222_v54 }
  0x5f   : > { %v225_v56 = vadd.f32 1e-05, %v224_v55 }
  0x61   : > { %405 = vrsqrt.f32 %v225_v56 }
  0x6b   : > { %v406_v58 = vpop.eup %405 }
  0x6c   : > { %v227_v59 = vmul.f32 %v406_v58, %v172_v57 }
  0x6e   : > { %v228_v61 = vmul.f32 %v227_v59, %v192_v24  ;;  %v229_v62 = vmul.f32 %v227_v59, %v193_v25  ;;  %v230_v63 = vmul.f32 %v227_v59, %v194_v26  ;;  %v231_v0 = vmul.f32 %v227_v59, %v195_v27 }
  0x6f   : > { %v232_v1 = vmul.f32 %v227_v59, %v196_v28  ;;  %v233_v2 = vmul.f32 %v227_v59, %v197_v29  ;;  %v234_v3 = vmul.f32 %v227_v59, %v198_v34  ;;  %v235_v4 = vmul.f32 %v227_v59, %v199_v40 }
  0x70   : > { %v236_v5 = vadd.f32 %v228_v61, %v173_v60  ;;  %v237_v6 = vadd.f32 %v229_v62, %v173_v60  ;;  %v238_v7 = vadd.f32 %v230_v63, %v173_v60  ;;  %v239_v8 = vadd.f32 %v231_v0, %v173_v60 }
  0x71   : > { %v240_v9 = vadd.f32 %v232_v1, %v173_v60  ;;  %v241_v10 = vadd.f32 %v233_v2, %v173_v60  ;;  %v242_v11 = vadd.f32 %v234_v3, %v173_v60  ;;  %v243_v12 = vadd.f32 %v235_v4, %v173_v60 }
  0x72   : > { %244 = vst.msk [vmem:[%s161_s4] sm:$0x1] %vm174_vm0, %v236_v5  ;;  %245 = vst.msk [vmem:[%s161_s4 + $0x1] sm:$0x1] %vm174_vm0, %v237_v6 }
  0x73   : > { %246 = vst.msk [vmem:[%s161_s4 + $0x2] sm:$0x1] %vm174_vm0, %v238_v7  ;;  %247 = vst.msk [vmem:[%s161_s4 + $0x3] sm:$0x1] %vm174_vm0, %v239_v8 }
  0x74   : > { %248 = vst.msk [vmem:[%s161_s4 + $0x4] sm:$0x1] %vm174_vm0, %v240_v9  ;;  %249 = vst.msk [vmem:[%s161_s4 + $0x5] sm:$0x1] %vm174_vm0, %v241_v10 }
  0x75   : > { %250 = vst.msk [vmem:[%s161_s4 + $0x6] sm:$0x1] %vm174_vm0, %v242_v11  ;;  %251 = vst.msk [vmem:[%s161_s4 + $0x7] sm:$0x1] %vm174_vm0, %v243_v12 }
  0x76   : > { %450 = shalt.err (!%p447_p1)
}
  0x77   : > { %s451_s26 = scalar_lea.hbm %s669_s13, 128  ;;  %s455_s6 = scalar_lea.hbm %s722_s2, 512 }
  0x78   : > { %p452_p3 = scmp.ne.s32.totalorder %s669_s13, %s451_s26  ;;  %p456_p0 = scmp.lt.u32.totalorder %s669_s13, %s722_s2 }
  0x79   : > { %p457_p2 = scmp.lt.u32.totalorder %s455_s6, %s451_s26  ;;  %p459_p6 = scmp.lt.u32.totalorder %s451_s26, %s669_s13 }
  0x7a   : > { %p453_p4 = pnand %p452_p3, %p729_p10 }
  0x7b   : > { %p458_p7 = por %p457_p2, %p456_p0 }
  0x7c   : > { %p454_p5 = pneg %p453_p4 }
  0x7d   : > { %p460_p11 = por %p459_p6, %p458_p7 }
  0x7f   : > { %p461_p12 = pnand %p460_p11, %p454_p5 }
  0x81   : > { %464 = shalt.err (!%p461_p12)
}
  0x82   : > { %s509_s30 = smov 16   ;;  %s510_s3 = smov 1  }
  0x83   : > { %357 = dma.vmem_to_hbm [thread:$0]  (%p729_p10), %s664_s7, 128, %s669_s13, %s253_s17, %s509_s30, %s509_s30, %s510_s3  }
  0x84 PF: > { %p368_p8 = scmp.ge.s32.totalorder %s503_s12, 2  ;;  %s281_s4 = sand.u32 1, %s491_s9  }
  0x85   : > { %p730_p9 = scmp.ne.s32.totalorder %s727_s22, 0  ;;  %s282_s8 = scalar_lea.sflag [#allocation4], %s281_s4 }
  0x87   : > { %p364_p13 = pnand %p368_p8, %p730_p9 }
  0x89   : > { %486 = dma.done.wait (!%p364_p13), %s282_s8, 128  }
  0x8a   : > { %488 = vsyncadd (!%p364_p13), %s282_s8, 4294967168  ;;  %p15_p1 = scmp.ge.s32.totalorder %s551_s15, 6   ;;  %s731_s9 = smov %s495_s10 }
  0x8b   : > { %s732_s10 = smov %s499_s11  ;;  %s733_s11 = smov %s563_s18 }
  0x8c   : > { %s734_s12 = smov %s551_s15  ;;  %17 = sbr.rel (!%p15_p1) target bundleno = 5 (0x5), region = 73 }
  0x93   :  { %287 = vsyncpa [#allocation3], 1 }
  0x94   :  { %289 = vsyncpa [#allocation3 + $0x1], 1 }
  0x95   :  { %290 = vsyncpa [#allocation4], 1 }
  0x96   :  { %292 = vsyncpa [#allocation4 + $0x1], 1 }

</bundles_post_ra>
